<compile_context>
chip_gen: v5e
topology: v5e:2x2
jax: 0.10.0
libtpu: 0.0.40
codegen_flags: <defaults>
</compile_context>

<pallas_src>
import jax
import jax.numpy as jnp
from jax.experimental import pallas as pl
from jax.experimental.pallas import tpu as pltpu


# ----------------------------- Pallas kernels ------------------------------ #
def _split_scale_kernel(x_ref, boxes_ref, scores_ref):
    # x_ref: (1, tile_n, 5 + nc) row-major tile (same layout as the PyTorch
    # input).  Static Ref-view slices -> one load each; the objectness
    # multiply broadcasts over the class lanes on the VPU.
    boxes_ref[...] = x_ref[:, :, 0:4]
    conf = x_ref[:, :, 4:5]                    # (1, tile_n, 1) objectness
    scores_ref[...] = x_ref[:, :, 5:] * conf   # broadcast over class lanes


def _split_kernel_single_class(x_ref, boxes_ref, scores_ref):
    # n_classes == 1 path: scores = objectness conf (no multiply), as yolov7.
    boxes_ref[...] = x_ref[:, :, 0:4]
    scores_ref[...] = x_ref[:, :, 4:5]


# ------------------------------- wrapper ----------------------------------- #
def split_boxes_scores(x, n_classes, *, tile_n=4096,
                       vmem_limit_bytes=32 * 1024 * 1024):
    """Pallas-backed equivalent of the ONNX_TRT pre-NMS slice/scale:

         boxes  = x[:, :, :4]
         conf   = x[:, :, 4:5]
         scores = conf                  if n_classes == 1
         scores = x[:, :, 5:] * conf    otherwise

    Input and outputs stay in the PyTorch row-major layout:
      x: (B, N, 5 + nc) -> boxes (B, N, 4), scores (B, N, nc).
    No relayout, pad, or trim passes are performed in the wrapper.
    """
    B, N, C = x.shape
    assert C == 5 + n_classes, (C, n_classes)

    # Tile the candidate-box axis.  No padding: grid = cdiv(N, tile) and the
    # ragged last block relies on Pallas clipping out-of-bounds output writes
    # (never rely on any "padded" output region being zero).
    tile = min(tile_n, N)
    if tile < N:
        tile = max((tile // 8) * 8, 8)   # keep second-minor dim a multiple of 8
    n_tiles = pl.cdiv(N, tile)

    out_classes = 1 if n_classes == 1 else n_classes
    kernel = (_split_kernel_single_class if n_classes == 1
              else _split_scale_kernel)

    itemsize = jnp.dtype(x.dtype).itemsize
    cost = pl.CostEstimate(
        flops=B * N * out_classes,
        transcendentals=0,
        bytes_accessed=B * N * (C + 4 + out_classes) * itemsize,
    )

    boxes, scores = pl.pallas_call(
        kernel,
        out_shape=(
            jax.ShapeDtypeStruct((B, N, 4), x.dtype),
            jax.ShapeDtypeStruct((B, N, out_classes), x.dtype),
        ),
        grid_spec=pltpu.PrefetchScalarGridSpec(
            num_scalar_prefetch=0,
            grid=(B, n_tiles),
            in_specs=[
                # Last dim == full channel dim, second-minor a multiple of 8
                # (or == N) -> legal block; reads straight from row-major HBM.
                pl.BlockSpec((1, tile, C), lambda b, i: (b, i, 0)),
            ],
            out_specs=[
                pl.BlockSpec((1, tile, 4), lambda b, i: (b, i, 0)),
                pl.BlockSpec((1, tile, out_classes), lambda b, i: (b, i, 0)),
            ],
        ),
        compiler_params=pltpu.CompilerParams(
            dimension_semantics=("parallel", "parallel"),
            vmem_limit_bytes=vmem_limit_bytes,
        ),
        cost_estimate=cost,
    )(x)
    return boxes, scores


# ----------------------------- ONNX_TRT module ----------------------------- #
class ONNX_TRT:
    """JAX/Pallas port of the yolov7 ONNX_TRT wrapper module."""

    def __init__(self, max_obj=100, iou_thres=0.45, score_thres=0.25,
                 max_wh=None, n_classes=80):
        assert max_wh is None
        self.background_class = (-1,)
        self.box_coding = (1,)
        self.iou_threshold = iou_thres
        self.max_obj = max_obj
        self.plugin_version = "1"
        self.score_activation = 0
        self.score_threshold = score_thres
        self.n_classes = n_classes

    def _trt_nms_stub(self, batch_size, num_classes, key):
        # TODO(synk): TRT_NMS is a TensorRT `EfficientNMS_TRT` plugin; its
        # PyTorch forward emits random placeholders (no real NMS semantics),
        # reproduced here deterministically in plain JAX.
        k1, k2, k3, k4 = jax.random.split(key, 4)
        num_det = jax.random.randint(
            k1, (batch_size, 1), 0, self.max_obj, dtype=jnp.int32)
        det_boxes = jax.random.normal(
            k2, (batch_size, self.max_obj, 4), dtype=jnp.float32)
        det_scores = jax.random.normal(
            k3, (batch_size, self.max_obj), dtype=jnp.float32)
        det_classes = jax.random.randint(
            k4, (batch_size, self.max_obj), 0, num_classes, dtype=jnp.int32)
        return num_det, det_boxes, det_scores, det_classes

    def forward(self, x, key):
        # Hot path (slice + conf*scores) on the Pallas kernel, row-major in
        # and out (exactly the layout EfficientNMS_TRT consumes).
        # NOTE: the placeholder NMS only uses the *shapes* of boxes/scores
        # (faithful to the PyTorch stub), so under jit XLA would DCE the
        # pallas_call; benchmark split_boxes_scores directly.
        boxes, scores = split_boxes_scores(x, self.n_classes)
        batch_size, _, num_classes = scores.shape
        del boxes  # values unused by the placeholder NMS
        return self._trt_nms_stub(batch_size, num_classes, key)

    __call__ = forward


# ------------------------------ demo / test --------------------------------- #
if __name__ == "__main__":
    # Small shapes; N=300 is not a multiple of 128 so the ragged-grid path is
    # exercised below with tile_n=128.  x: (batch, num_boxes, 5 + n_classes).
    B, N, n_classes = 2, 300, 80
    key = jax.random.PRNGKey(0)
    kx, knms, kx1 = jax.random.split(key, 3)
    x = jax.random.normal(kx, (B, N, 5 + n_classes), dtype=jnp.float32)

    model = ONNX_TRT(max_obj=100, iou_thres=0.45, score_thres=0.25,
                     max_wh=None, n_classes=n_classes)

    ref_boxes = x[:, :, :4]
    ref_scores = x[:, :, 5:] * x[:, :, 4:5]

    # --- Pallas hot path vs. pure-JAX reference (single-tile path) ---
    boxes, scores = split_boxes_scores(x, n_classes)
    jax.block_until_ready((boxes, scores))
    assert boxes.shape == (B, N, 4)
    assert scores.shape == (B, N, n_classes)
    assert jnp.allclose(boxes, ref_boxes, atol=1e-6)
    assert jnp.allclose(scores, ref_scores, atol=1e-6)

    # --- ragged multi-tile grid (tile=128, last block partial, no pad/trim) ---
    boxes_r, scores_r = split_boxes_scores(x, n_classes, tile_n=128)
    jax.block_until_ready((boxes_r, scores_r))
    assert jnp.allclose(boxes_r, ref_boxes, atol=1e-6)
    assert jnp.allclose(scores_r, ref_scores, atol=1e-6)

    # --- single-class path (scores = conf, no multiply) ---
    x1 = jax.random.normal(kx1, (1, 200, 6), dtype=jnp.float32)
    b1, s1 = split_boxes_scores(x1, 1)
    jax.block_until_ready((b1, s1))
    assert jnp.allclose(b1, x1[:, :, :4], atol=1e-6)
    assert jnp.allclose(s1, x1[:, :, 4:5], atol=1e-6)

    # --- bf16 end-to-end (halves HBM traffic; kernel is dtype-agnostic) ---
    x_bf = x.astype(jnp.bfloat16)
    b_bf, s_bf = split_boxes_scores(x_bf, n_classes)
    jax.block_until_ready((b_bf, s_bf))
    assert b_bf.dtype == jnp.bfloat16 and s_bf.dtype == jnp.bfloat16
    assert jnp.allclose(b_bf.astype(jnp.float32), ref_boxes, atol=3e-2, rtol=3e-2)
    assert jnp.allclose(s_bf.astype(jnp.float32), ref_scores, atol=5e-2, rtol=5e-2)

    # --- full module forward (includes the TRT_NMS placeholder stub) ---
    num_det, det_boxes, det_scores, det_classes = model(x, knms)
    jax.block_until_ready((num_det, det_boxes, det_scores, det_classes))
    assert num_det.shape == (B, 1) and num_det.dtype == jnp.int32
    assert det_boxes.shape == (B, 100, 4)
    assert det_scores.shape == (B, 100)
    assert det_classes.shape == (B, 100) and det_classes.dtype == jnp.int32

    print("KERNEL_OK")
</pallas_src>

<mosaic_0001>
module attributes {stable_mosaic.version = 11 : i64} {
  func.func @_split_scale_kernel(%arg0: i32, %arg1: i32, %arg2: memref<1x300x85xf32, #tpu.memory_space<vmem>>, %arg3: memref<1x300x4xf32, #tpu.memory_space<vmem>>, %arg4: memref<1x300x80xf32, #tpu.memory_space<vmem>>) attributes {dimension_semantics = [#tpu.dimension_semantics<parallel>, #tpu.dimension_semantics<parallel>], iteration_bounds = array<i64: 2, 1>, scalar_prefetch = 0 : i64, scratch_operands = 0 : i64, tpu.core_type = #tpu.core_type<tc>, window_params = [{transform_indices = @transform_0, window_bounds = array<i64: 1, 300, 85>}, {transform_indices = @transform_1, window_bounds = array<i64: 1, 300, 4>}, {transform_indices = @transform_2, window_bounds = array<i64: 1, 300, 80>}]} {
    %c0 = arith.constant 0 : index
    %c0_0 = arith.constant 0 : index
    %c0_1 = arith.constant 0 : index
    %0 = vector.load %arg2[%c0, %c0_0, %c0_1] : memref<1x300x85xf32, #tpu.memory_space<vmem>>, vector<1x300x4xf32>
    %c0_2 = arith.constant 0 : index
    %c0_3 = arith.constant 0 : index
    %c0_4 = arith.constant 0 : index
    %1 = vector.load %arg3[%c0_2, %c0_3, %c0_4] : memref<1x300x4xf32, #tpu.memory_space<vmem>>, vector<1x300x4xf32>
    tpu.vector_store %arg3[%c0_2, %c0_3, %c0_4], %0 {strides = array<i32>} : memref<1x300x4xf32, #tpu.memory_space<vmem>>, vector<1x300x4xf32>,
    %c0_5 = arith.constant 0 : index
    %c0_6 = arith.constant 0 : index
    %c4 = arith.constant 4 : index
    %2 = vector.load %arg2[%c0_5, %c0_6, %c4] : memref<1x300x85xf32, #tpu.memory_space<vmem>>, vector<1x300x1xf32>
    %c0_7 = arith.constant 0 : index
    %c0_8 = arith.constant 0 : index
    %c5 = arith.constant 5 : index
    %3 = vector.load %arg2[%c0_7, %c0_8, %c5] : memref<1x300x85xf32, #tpu.memory_space<vmem>>, vector<1x300x80xf32>
    %4 = vector.broadcast %2 : vector<1x300x1xf32> to vector<1x300x80xf32>
    %5 = arith.mulf %3, %4 : vector<1x300x80xf32>
    %c0_9 = arith.constant 0 : index
    %c0_10 = arith.constant 0 : index
    %c0_11 = arith.constant 0 : index
    %6 = vector.load %arg4[%c0_9, %c0_10, %c0_11] : memref<1x300x80xf32, #tpu.memory_space<vmem>>, vector<1x300x80xf32>
    tpu.vector_store %arg4[%c0_9, %c0_10, %c0_11], %5 {strides = array<i32>} : memref<1x300x80xf32, #tpu.memory_space<vmem>>, vector<1x300x80xf32>,
    return
  }
  func.func @transform_0(%arg0: i32, %arg1: i32) -> (i32, i32, i32) {
    %c0_i32 = arith.constant 0 : i32
    %c0_i32_0 = arith.constant 0 : i32
    return %arg0, %arg1, %c0_i32 : i32, i32, i32
  }
  func.func @transform_1(%arg0: i32, %arg1: i32) -> (i32, i32, i32) {
    %c0_i32 = arith.constant 0 : i32
    %c0_i32_0 = arith.constant 0 : i32
    return %arg0, %arg1, %c0_i32 : i32, i32, i32
  }
  func.func @transform_2(%arg0: i32, %arg1: i32) -> (i32, i32, i32) {
    %c0_i32 = arith.constant 0 : i32
    %c0_i32_0 = arith.constant 0 : i32
    return %arg0, %arg1, %c0_i32 : i32, i32, i32
  }
}

</mosaic_0001>

<bundles_post_ra>
// kernel: tpu_custom_call.1
= control target key start
LH: loop header
LB: loop body
LE: loop exit
PB: predicated region body
PF: predicated region fallthrough
CT: control target
= control target key end

     0   :  { %s961_s9 = smov 0   ;;  %s963_s10 = smov 0   ;;  %s1424_s0 = inlined_call_operand.vmem [shape: f32[2,300,85], index: 0, kind: input, shape index: {}]   ;;  %s1425_s1 = inlined_call_operand.vmem [shape: f32[2,300,4], index: 1, kind: output, shape index: {0}]   ;;  %s1426_s2 = inlined_call_operand.vmem [shape: f32[2,300,80], index: 2, kind: output, shape index: {1}]  }
   0x1   :  { %s965_s11 = smov 0  }
   0x2 LB: > { %s25_s12 = sadd.s32 1, %s938_s10  ;;  %p884_p0 = scmp.ge.s32.totalorder %s942_s11, 1  ;;  %s942_s11 = sphi %s965_s11, %s13_s11   ;;  %s938_s10 = sphi %s963_s10, %s1428_s10   ;;  %s934_s9 = sphi %s961_s9, %s1427_s9  }
   0x3   : > { %p27_p1 = scmp.ge.s32.totalorder %s25_s12, 2  ;;  %p138_p2 = scmp.lt.s32.totalorder %s942_s11, 3 }
   0x5   : > { %s1430_s12 = smov (%p27_p1, %s25_s12), 0  ;;  %p139_p3 = pnand %p884_p0, %p138_p2 }
   0x6   : > { %p178_p4 = scmp.lt.s32.totalorder (!%p139_p3), %s934_s9, 1  ;;  %s945_s20 = smov (!%p139_p3), 123  }
   0x7   : > { %142 = sbr.rel (%p139_p3) target bundleno = 355 (0x163), region = 24 }
   0xc   : > { %v944_v0 = vmov 4   ;;  %s1432_s9 = smov (!%p178_p4, %s934_s9), 1  ;;  %vm245_vm0 = vcmask 31744   ;;  %vm283_vm1 = vcmask 27648   ;;  %vm703_vm2 = vcmask 654336  }
   0xd   : > { %919 = vset.pattern.permute.xlu2 %v944_v0  ;;  %918 = vset.pattern.permute.xlu1 %v944_v0  ;;  %s979_s13 = smul.u32 304, %s1432_s9  ;;  %vm741_vm3 = vcmask 650240  }
   0xe   : > { %917 = vset.pattern.permute.xlu0 %v944_v0 }
   0xf   : > { %s985_s16 = scalar_lea.vmem %s1424_s0, %s979_s13  ;;  %s991_s19 = scalar_lea.vmem %s1425_s1, %s979_s13 }
  0x10   : > { %v994_v1 = vld [vmem:[%s985_s16 + $0x20] sm:$0xff]  ;;  %v1001_v3 = vld [vmem:[%s985_s16 + $0x8] sm:$0xff]  ;;  %v1004_v4 = vld [vmem:[%s985_s16 + $0x10] sm:$0xff]  ;;  %s1330_s23 = scalar_lea.vmem %s1426_s2, %s979_s13 }
  0x11   : > { %v997_v2 = vld [vmem:[%s985_s16] sm:$0xff]  ;;  %345 = vperm.xlu2 %919, %v994_v1   ;;  %247 = vst.msk [vmem:[%s991_s19 + $0x8] sm:$0xff] %vm245_vm0, %v1001_v3  ;;  %335 = vperm.xlu1 %918, %v1004_v4   ;;  %v1015_v5 = vld [vmem:[%s985_s16 + $0x18] sm:$0xff]  ;;  %v1024_v6 = vld [vmem:[%s985_s16 + $0x28] sm:$0xff] }
  0x12   : > { %246 = vst.msk [vmem:[%s991_s19] sm:$0xff] %vm245_vm0, %v997_v2  ;;  %325 = vperm.xlu0 %917, %v997_v2   ;;  %v1030_v7 = vld [vmem:[%s985_s16 + $0x30] sm:$0xff]  ;;  %v1036_v8 = vld [vmem:[%s985_s16 + $0x38] sm:$0xff]  ;;  %v1042_v9 = vld [vmem:[%s985_s16 + $0x40] sm:$0xff] }
  0x13   : > { %248 = vst.msk [vmem:[%s991_s19 + $0x10] sm:$0xff] %vm245_vm0, %v1004_v4  ;;  %v1048_v10 = vld [vmem:[%s985_s16 + $0x48] sm:$0xff]  ;;  %v1056_v11 = vld [vmem:[%s985_s16 + $0x50] sm:$0xff]  ;;  %v1063_v12 = vld [vmem:[%s985_s16 + $0x58] sm:$0xff] }
  0x14   : > { %249 = vst.msk [vmem:[%s991_s19 + $0x18] sm:$0xff] %vm245_vm0, %v1015_v5  ;;  %v1069_v13 = vld [vmem:[%s985_s16 + $0x60] sm:$0xff]  ;;  %v1075_v14 = vld [vmem:[%s985_s16 + $0x68] sm:$0xff]  ;;  %v1081_v15 = vld [vmem:[%s985_s16 + $0x70] sm:$0xff] }
  0x15   : > { %250 = vst.msk [vmem:[%s991_s19 + $0x20] sm:$0xff] %vm245_vm0, %v994_v1  ;;  %v1087_v16 = vld [vmem:[%s985_s16 + $0x78] sm:$0xff]  ;;  %v1093_v17 = vld [vmem:[%s985_s16 + $0x80] sm:$0xff]  ;;  %v1099_v18 = vld [vmem:[%s985_s16 + $0x88] sm:$0xff] }
  0x16   : > { %251 = vst.msk [vmem:[%s991_s19 + $0x28] sm:$0xff] %vm245_vm0, %v1024_v6  ;;  %v1107_v19 = vld [vmem:[%s985_s16 + $0x90] sm:$0xff]  ;;  %v1114_v20 = vld [vmem:[%s985_s16 + $0x98] sm:$0xff]  ;;  %v1120_v21 = vld [vmem:[%s985_s16 + $0xa0] sm:$0xff] }
  0x17   : > { %252 = vst.msk [vmem:[%s991_s19 + $0x30] sm:$0xff] %vm245_vm0, %v1030_v7  ;;  %v1126_v22 = vld [vmem:[%s985_s16 + $0xa8] sm:$0xff]  ;;  %v1132_v23 = vld [vmem:[%s985_s16 + $0xb0] sm:$0xff]  ;;  %v1138_v24 = vld [vmem:[%s985_s16 + $0xb8] sm:$0xff] }
  0x18   : > { %253 = vst.msk [vmem:[%s991_s19 + $0x38] sm:$0xff] %vm245_vm0, %v1036_v8  ;;  %v1144_v25 = vld [vmem:[%s985_s16 + $0xc0] sm:$0xff]  ;;  %v1150_v26 = vld [vmem:[%s985_s16 + $0xc8] sm:$0xff]  ;;  %v1158_v27 = vld [vmem:[%s985_s16 + $0xd0] sm:$0xff] }
  0x19   : > { %254 = vst.msk [vmem:[%s991_s19 + $0x40] sm:$0xff] %vm245_vm0, %v1042_v9  ;;  %350 = vperm.xlu2 %919, %v1024_v6   ;;  %340 = vperm.xlu1 %918, %v1015_v5   ;;  %v1165_v28 = vld [vmem:[%s985_s16 + $0xd8] sm:$0xff]  ;;  %v1171_v29 = vld [vmem:[%s985_s16 + $0xe0] sm:$0xff]  ;;  %v1177_v30 = vld [vmem:[%s985_s16 + $0xe8] sm:$0xff] }
  0x1a   : > { %330 = vperm.xlu0 %917, %v1001_v3   ;;  %255 = vst.msk [vmem:[%s991_s19 + $0x48] sm:$0xff] %vm245_vm0, %v1048_v10  ;;  %v1183_v31 = vld [vmem:[%s985_s16 + $0xf0] sm:$0xff]  ;;  %v1189_v32 = vld [vmem:[%s985_s16 + $0xf8] sm:$0xff]  ;;  %v1195_v33 = vld [vmem:[%s985_s16 + $0x100] sm:$0xff] }
  0x1b   : > { %256 = vst.msk [vmem:[%s991_s19 + $0x50] sm:$0xff] %vm245_vm0, %v1056_v11  ;;  %v1201_v34 = vld [vmem:[%s985_s16 + $0x108] sm:$0xff]  ;;  %v1209_v35 = vld [vmem:[%s985_s16 + $0x110] sm:$0xff]  ;;  %v1216_v36 = vld [vmem:[%s985_s16 + $0x118] sm:$0xff] }
  0x1c   : > { %257 = vst.msk [vmem:[%s991_s19 + $0x58] sm:$0xff] %vm245_vm0, %v1063_v12  ;;  %v244_v37 = vld [vmem:[%s985_s16 + $0x128] sm:$0xf]  ;;  %v1223_v38 = vld [vmem:[%s985_s16 + $0x120] sm:$0xff] }
  0x1d   : > { %258 = vst.msk [vmem:[%s991_s19 + $0x60] sm:$0xff] %vm245_vm0, %v1069_v13  ;;  %v1254_v40 = vld [vmem:[%s985_s16 + $0x128] sm:$0xf] }
  0x1e   : > { %259 = vst.msk [vmem:[%s991_s19 + $0x68] sm:$0xff] %vm245_vm0, %v1075_v14 }
  0x1f   : > { %260 = vst.msk [vmem:[%s991_s19 + $0x70] sm:$0xff] %vm245_vm0, %v1081_v15 }
  0x20   : > { %261 = vst.msk [vmem:[%s991_s19 + $0x78] sm:$0xff] %vm245_vm0, %v1087_v16 }
  0x21   : > { %262 = vst.msk [vmem:[%s991_s19 + $0x80] sm:$0xff] %vm245_vm0, %v1093_v17  ;;  %365 = vperm.xlu2 %919, %v1042_v9   ;;  %360 = vperm.xlu1 %918, %v1036_v8  }
  0x22   : > { %355 = vperm.xlu0 %917, %v1030_v7   ;;  %263 = vst.msk [vmem:[%s991_s19 + $0x88] sm:$0xff] %vm245_vm0, %v1099_v18 }
  0x23   : > { %264 = vst.msk [vmem:[%s991_s19 + $0x90] sm:$0xff] %vm245_vm0, %v1107_v19 }
  0x24   : > { %265 = vst.msk [vmem:[%s991_s19 + $0x98] sm:$0xff] %vm245_vm0, %v1114_v20 }
  0x25   : > { %266 = vst.msk [vmem:[%s991_s19 + $0xa0] sm:$0xff] %vm245_vm0, %v1120_v21 }
  0x26   : > { %267 = vst.msk [vmem:[%s991_s19 + $0xa8] sm:$0xff] %vm245_vm0, %v1126_v22 }
  0x27   : > { %268 = vst.msk [vmem:[%s991_s19 + $0xb0] sm:$0xff] %vm245_vm0, %v1132_v23 }
  0x28   : > { %269 = vst.msk [vmem:[%s991_s19 + $0xb8] sm:$0xff] %vm245_vm0, %v1138_v24 }
  0x29   : > { %270 = vst.msk [vmem:[%s991_s19 + $0xc0] sm:$0xff] %vm245_vm0, %v1144_v25  ;;  %380 = vperm.xlu2 %919, %v1063_v12   ;;  %375 = vperm.xlu1 %918, %v1056_v11  }
  0x2a   : > { %370 = vperm.xlu0 %917, %v1048_v10   ;;  %271 = vst.msk [vmem:[%s991_s19 + $0xc8] sm:$0xff] %vm245_vm0, %v1150_v26 }
  0x2b   : > { %272 = vst.msk [vmem:[%s991_s19 + $0xd0] sm:$0xff] %vm245_vm0, %v1158_v27 }
  0x2c   : > { %273 = vst.msk [vmem:[%s991_s19 + $0xd8] sm:$0xff] %vm245_vm0, %v1165_v28 }
  0x2d   : > { %274 = vst.msk [vmem:[%s991_s19 + $0xe0] sm:$0xff] %vm245_vm0, %v1171_v29 }
  0x2e   : > { %275 = vst.msk [vmem:[%s991_s19 + $0xe8] sm:$0xff] %vm245_vm0, %v1177_v30 }
  0x2f   : > { %276 = vst.msk [vmem:[%s991_s19 + $0xf0] sm:$0xff] %vm245_vm0, %v1183_v31 }
  0x30   : > { %277 = vst.msk [vmem:[%s991_s19 + $0xf8] sm:$0xff] %vm245_vm0, %v1189_v32 }
  0x31   : > { %278 = vst.msk [vmem:[%s991_s19 + $0x100] sm:$0xff] %vm245_vm0, %v1195_v33  ;;  %395 = vperm.xlu2 %919, %v1081_v15   ;;  %390 = vperm.xlu1 %918, %v1075_v14  }
  0x32   : > { %385 = vperm.xlu0 %917, %v1069_v13   ;;  %279 = vst.msk [vmem:[%s991_s19 + $0x108] sm:$0xff] %vm245_vm0, %v1201_v34 }
  0x33   : > { %280 = vst.msk [vmem:[%s991_s19 + $0x110] sm:$0xff] %vm245_vm0, %v1209_v35 }
  0x34   : > { %281 = vst.msk [vmem:[%s991_s19 + $0x118] sm:$0xff] %vm245_vm0, %v1216_v36 }
  0x35   : > { %282 = vst.msk [vmem:[%s991_s19 + $0x120] sm:$0xff] %vm245_vm0, %v1223_v38 }
  0x36   : > { %284 = vst.msk [vmem:[%s991_s19 + $0x128] sm:$0xf] %vm283_vm1, %v244_v37 }
  0x39   : > { %410 = vperm.xlu2 %919, %v1099_v18   ;;  %405 = vperm.xlu1 %918, %v1093_v17  }
  0x3a   : > { %400 = vperm.xlu0 %917, %v1087_v16  }
  0x41   : > { %425 = vperm.xlu2 %919, %v1120_v21   ;;  %420 = vperm.xlu1 %918, %v1114_v20  }
  0x42   : > { %415 = vperm.xlu0 %917, %v1107_v19  }
  0x49   : > { %440 = vperm.xlu2 %919, %v1138_v24   ;;  %435 = vperm.xlu1 %918, %v1132_v23  }
  0x4a   : > { %430 = vperm.xlu0 %917, %v1126_v22  }
  0x51   : > { %455 = vperm.xlu2 %919, %v1158_v27   ;;  %450 = vperm.xlu1 %918, %v1150_v26  }
  0x52   : > { %445 = vperm.xlu0 %917, %v1144_v25  }
  0x59   : > { %470 = vperm.xlu2 %919, %v1177_v30   ;;  %465 = vperm.xlu1 %918, %v1171_v29  }
  0x5a   : > { %460 = vperm.xlu0 %917, %v1165_v28  }
  0x61   : > { %485 = vperm.xlu2 %919, %v1195_v33   ;;  %480 = vperm.xlu1 %918, %v1189_v32  }
  0x62   : > { %475 = vperm.xlu0 %917, %v1183_v31  }
  0x69   : > { %500 = vperm.xlu2 %919, %v1216_v36   ;;  %495 = vperm.xlu1 %918, %v1209_v35  }
  0x6a   : > { %490 = vperm.xlu0 %917, %v1201_v34  }
  0x6b   : > { %v346_v39 = vpop.permute.xlu2 %345 }
  0x6c   : > { %v517_v53 = vmul.f32 %v346_v39, %v994_v1 }
  0x71   : > { %510 = vperm.xlu1 %918, %v1254_v40  }
  0x72   : > { %505 = vperm.xlu0 %917, %v1223_v38  }
  0x73   : > { %v351_v41 = vpop.permute.xlu2 %350 }
  0x74   : > { %v518_v48 = vmul.f32 %v351_v41, %v1024_v6 }
  0x7b   : > { %v366_v42 = vpop.permute.xlu2 %365 }
  0x7c   : > { %v521_v55 = vmul.f32 %v366_v42, %v1042_v9 }
  0x83   : > { %v336_v44 = vpop.permute.xlu1 %335  ;;  %v381_v47 = vpop.permute.xlu2 %380 }
  0x84   : > { %v326_v43 = vpop.permute.xlu0 %325  ;;  %v515_v46 = vmul.f32 %v336_v44, %v1004_v4  ;;  %v524_v0 = vmul.f32 %v381_v47, %v1063_v12 }
  0x85   : > { %v513_v45 = vmul.f32 %v326_v43, %v997_v2 }
  0x86   : > { %593 = vrot.lane.b32.xlu1 %v515_v46, %s945_s20 }
  0x87   : > { %589 = vrot.lane.b32.xlu2 %v513_v45, %s945_s20 }
  0x8b   : > { %v341_v50 = vpop.permute.xlu1 %340  ;;  %v396_v54 = vpop.permute.xlu2 %395 }
  0x8c   : > { %v331_v49 = vpop.permute.xlu0 %330  ;;  %v516_v52 = vmul.f32 %v341_v50, %v1015_v5  ;;  %v527_v5 = vmul.f32 %v396_v54, %v1081_v15 }
  0x8d   : > { %v514_v51 = vmul.f32 %v331_v49, %v1001_v3 }
  0x8e   : > { %599 = vrot.lane.b32.xlu1 %v518_v48, %s945_s20 }
  0x8f   : > { %591 = vrot.lane.b32.xlu0 %v514_v51, %s945_s20  ;;  %595 = vrot.lane.b32.xlu2 %v516_v52, %s945_s20 }
  0x93   : > { %v361_v57 = vpop.permute.xlu1 %360  ;;  %v411_v60 = vpop.permute.xlu2 %410 }
  0x94   : > { %v356_v56 = vpop.permute.xlu0 %355  ;;  %v520_v61 = vmul.f32 %v361_v57, %v1036_v8 }
  0x95   : > { %v519_v58 = vmul.f32 %v356_v56, %v1030_v7 }
  0x96   : > { %605 = vrot.lane.b32.xlu1 %v521_v55, %s945_s20 }
  0x97   : > { %597 = vrot.lane.b32.xlu0 %v517_v53, %s945_s20  ;;  %601 = vrot.lane.b32.xlu2 %v519_v58, %s945_s20 }
  0x9b   : > { %v376_v62 = vpop.permute.xlu1 %375  ;;  %v426_v6 = vpop.permute.xlu2 %425 }
  0x9c   : > { %v371_v59 = vpop.permute.xlu0 %370  ;;  %v523_v2 = vmul.f32 %v376_v62, %v1056_v11  ;;  %v530_v11 = vmul.f32 %v411_v60, %v1099_v18 }
  0x9d   : > { %v522_v63 = vmul.f32 %v371_v59, %v1048_v10 }
  0x9e   : > { %611 = vrot.lane.b32.xlu1 %v524_v0, %s945_s20 }
  0x9f   : > { %603 = vrot.lane.b32.xlu0 %v520_v61, %s945_s20  ;;  %607 = vrot.lane.b32.xlu2 %v522_v63, %s945_s20 }
  0xa3   : > { %v391_v3 = vpop.permute.xlu1 %390  ;;  %v441_v12 = vpop.permute.xlu2 %440 }
  0xa4   : > { %v386_v1 = vpop.permute.xlu0 %385  ;;  %v526_v8 = vmul.f32 %v391_v3, %v1075_v14  ;;  %v533_v14 = vmul.f32 %v426_v6, %v1120_v21 }
  0xa5   : > { %v525_v4 = vmul.f32 %v386_v1, %v1069_v13 }
  0xa6   : > { %617 = vrot.lane.b32.xlu1 %v527_v5, %s945_s20 }
  0xa7   : > { %609 = vrot.lane.b32.xlu0 %v523_v2, %s945_s20  ;;  %613 = vrot.lane.b32.xlu2 %v525_v4, %s945_s20 }
  0xab   : > { %v406_v9 = vpop.permute.xlu1 %405 }
  0xac   : > { %v401_v7 = vpop.permute.xlu0 %400  ;;  %v529_v15 = vmul.f32 %v406_v9, %v1093_v17  ;;  %v536_v17 = vmul.f32 %v441_v12, %v1138_v24 }
  0xad   : > { %v528_v10 = vmul.f32 %v401_v7, %v1087_v16  ;;  %v456_v16 = vpop.permute.xlu2 %455 }
  0xae   : > { %623 = vrot.lane.b32.xlu1 %v530_v11, %s945_s20 }
  0xaf   : > { %615 = vrot.lane.b32.xlu0 %v526_v8, %s945_s20  ;;  %619 = vrot.lane.b32.xlu2 %v528_v10, %s945_s20 }
  0xb3   : > { %v421_v37 = vpop.permute.xlu1 %420 }
  0xb4   : > { %v416_v13 = vpop.permute.xlu0 %415  ;;  %v532_v41 = vmul.f32 %v421_v37, %v1114_v20  ;;  %v539_v20 = vmul.f32 %v456_v16, %v1158_v27 }
  0xb5   : > { %v531_v39 = vmul.f32 %v416_v13, %v1107_v19  ;;  %v471_v21 = vpop.permute.xlu2 %470 }
  0xb6   : > { %629 = vrot.lane.b32.xlu1 %v533_v14, %s945_s20  ;;  %v542_v49 = vmul.f32 %v471_v21, %v1177_v30 }
  0xb7   : > { %621 = vrot.lane.b32.xlu0 %v529_v15, %s945_s20  ;;  %625 = vrot.lane.b32.xlu2 %v531_v39, %s945_s20 }
  0xbb   : > { %v436_v42 = vpop.permute.xlu1 %435 }
  0xbc   : > { %v431_v18 = vpop.permute.xlu0 %430  ;;  %v535_v44 = vmul.f32 %v436_v42, %v1132_v23 }
  0xbd   : > { %v534_v43 = vmul.f32 %v431_v18, %v1126_v22  ;;  %v486_v23 = vpop.permute.xlu2 %485 }
  0xbe   : > { %635 = vrot.lane.b32.xlu1 %v536_v17, %s945_s20 }
  0xbf   : > { %627 = vrot.lane.b32.xlu0 %v532_v41, %s945_s20  ;;  %631 = vrot.lane.b32.xlu2 %v534_v43, %s945_s20 }
  0xc3   : > { %v451_v45 = vpop.permute.xlu1 %450 }
  0xc4   : > { %v446_v19 = vpop.permute.xlu0 %445  ;;  %v538_v24 = vmul.f32 %v451_v45, %v1150_v26  ;;  %v545_v26 = vmul.f32 %v486_v23, %v1195_v33 }
  0xc5   : > { %v537_v46 = vmul.f32 %v446_v19, %v1144_v25 }
  0xc6   : > { %641 = vrot.lane.b32.xlu1 %v539_v20, %s945_s20 }
  0xc7   : > { %633 = vrot.lane.b32.xlu0 %v535_v44, %s945_s20  ;;  %637 = vrot.lane.b32.xlu2 %v537_v46, %s945_s20 }
  0xcb   : > { %v466_v47 = vpop.permute.xlu1 %465 }
  0xcc   : > { %v461_v22 = vpop.permute.xlu0 %460  ;;  %v541_v27 = vmul.f32 %v466_v47, %v1171_v29 }
  0xcd   : > { %v540_v48 = vmul.f32 %v461_v22, %v1165_v28  ;;  %v501_v28 = vpop.permute.xlu2 %500 }
  0xce   : > { %647 = vrot.lane.b32.xlu1 %v542_v49, %s945_s20  ;;  %v548_v54 = vmul.f32 %v501_v28, %v1216_v36 }
  0xcf   : > { %639 = vrot.lane.b32.xlu0 %v538_v24, %s945_s20  ;;  %643 = vrot.lane.b32.xlu2 %v540_v48, %s945_s20 }
  0xd3   : > { %v481_v51 = vpop.permute.xlu1 %480 }
  0xd4   : > { %v476_v25 = vpop.permute.xlu0 %475  ;;  %v544_v52 = vmul.f32 %v481_v51, %v1189_v32 }
  0xd5   : > { %v543_v50 = vmul.f32 %v476_v25, %v1183_v31 }
  0xd6   : > { %653 = vrot.lane.b32.xlu1 %v545_v26, %s945_s20 }
  0xd7   : > { %645 = vrot.lane.b32.xlu0 %v541_v27, %s945_s20  ;;  %649 = vrot.lane.b32.xlu2 %v543_v50, %s945_s20 }
  0xdb   : > { %v496_v29 = vpop.permute.xlu1 %495 }
  0xdc   : > { %v491_v30 = vpop.permute.xlu0 %490  ;;  %v547_v33 = vmul.f32 %v496_v29, %v1209_v35 }
  0xdd   : > { %v546_v53 = vmul.f32 %v491_v30, %v1201_v34 }
  0xde   : > { %659 = vrot.lane.b32.xlu1 %v548_v54, %s945_s20 }
  0xdf   : > { %651 = vrot.lane.b32.xlu0 %v544_v52, %s945_s20  ;;  %655 = vrot.lane.b32.xlu2 %v546_v53, %s945_s20 }
  0xe1   : > { %v590_v31 = vpop.permute.xlu2 %589 }
  0xe2   : > { %704 = vst.msk [vmem:[%s1330_s23] sm:$0xff] %vm703_vm2, %v590_v31 }
  0xe3   : > { %v511_v36 = vpop.permute.xlu1 %510 }
  0xe4   : > { %v506_v32 = vpop.permute.xlu0 %505  ;;  %v550_v56 = vmul.f32 %v511_v36, %v1254_v40 }
  0xe5   : > { %v549_v34 = vmul.f32 %v506_v32, %v1223_v38 }
  0xe7   : > { %657 = vrot.lane.b32.xlu0 %v547_v33, %s945_s20  ;;  %661 = vrot.lane.b32.xlu2 %v549_v34, %s945_s20 }
  0xe9   : > { %v596_v55 = vpop.permute.xlu2 %595 }
  0xea   : > { %707 = vst.msk [vmem:[%s1330_s23 + $0x18] sm:$0xff] %vm703_vm2, %v596_v55 }
  0xef   : > { %663 = vrot.lane.b32.xlu0 %v550_v56, %s945_s20 }
  0xf1   : > { %v602_v57 = vpop.permute.xlu2 %601 }
  0xf2   : > { %710 = vst.msk [vmem:[%s1330_s23 + $0x30] sm:$0xff] %vm703_vm2, %v602_v57 }
  0xf8   : > { %v594_v35 = vpop.permute.xlu1 %593 }
  0xf9   : > { %v608_v38 = vpop.permute.xlu2 %607  ;;  %706 = vst.msk [vmem:[%s1330_s23 + $0x10] sm:$0xff] %vm703_vm2, %v594_v35 }
  0xfa   : > { %713 = vst.msk [vmem:[%s1330_s23 + $0x48] sm:$0xff] %vm703_vm2, %v608_v38 }
 0x100   : > { %v600_v59 = vpop.permute.xlu1 %599 }
 0x101   : > { %v592_v58 = vpop.permute.xlu0 %591  ;;  %v614_v40 = vpop.permute.xlu2 %613  ;;  %709 = vst.msk [vmem:[%s1330_s23 + $0x28] sm:$0xff] %vm703_vm2, %v600_v59 }
 0x102   : > { %705 = vst.msk [vmem:[%s1330_s23 + $0x8] sm:$0xff] %vm703_vm2, %v592_v58 }
 0x103   : > { %716 = vst.msk [vmem:[%s1330_s23 + $0x60] sm:$0xff] %vm703_vm2, %v614_v40 }
 0x108   : > { %v606_v61 = vpop.permute.xlu1 %605 }
 0x109   : > { %v598_v60 = vpop.permute.xlu0 %597  ;;  %v620_v62 = vpop.permute.xlu2 %619  ;;  %712 = vst.msk [vmem:[%s1330_s23 + $0x40] sm:$0xff] %vm703_vm2, %v606_v61 }
 0x10a   : > { %708 = vst.msk [vmem:[%s1330_s23 + $0x20] sm:$0xff] %vm703_vm2, %v598_v60 }
 0x10b   : > { %719 = vst.msk [vmem:[%s1330_s23 + $0x78] sm:$0xff] %vm703_vm2, %v620_v62 }
 0x110   : > { %v612_v0 = vpop.permute.xlu1 %611 }
 0x111   : > { %v604_v63 = vpop.permute.xlu0 %603  ;;  %v626_v1 = vpop.permute.xlu2 %625  ;;  %715 = vst.msk [vmem:[%s1330_s23 + $0x58] sm:$0xff] %vm703_vm2, %v612_v0 }
 0x112   : > { %711 = vst.msk [vmem:[%s1330_s23 + $0x38] sm:$0xff] %vm703_vm2, %v604_v63 }
 0x113   : > { %722 = vst.msk [vmem:[%s1330_s23 + $0x90] sm:$0xff] %vm703_vm2, %v626_v1 }
 0x118   : > { %v618_v3 = vpop.permute.xlu1 %617 }
 0x119   : > { %v610_v2 = vpop.permute.xlu0 %609  ;;  %v632_v4 = vpop.permute.xlu2 %631  ;;  %718 = vst.msk [vmem:[%s1330_s23 + $0x70] sm:$0xff] %vm703_vm2, %v618_v3 }
 0x11a   : > { %714 = vst.msk [vmem:[%s1330_s23 + $0x50] sm:$0xff] %vm703_vm2, %v610_v2 }
 0x11b   : > { %725 = vst.msk [vmem:[%s1330_s23 + $0xa8] sm:$0xff] %vm703_vm2, %v632_v4 }
 0x120   : > { %v624_v6 = vpop.permute.xlu1 %623 }
 0x121   : > { %v616_v5 = vpop.permute.xlu0 %615  ;;  %v638_v7 = vpop.permute.xlu2 %637  ;;  %721 = vst.msk [vmem:[%s1330_s23 + $0x88] sm:$0xff] %vm703_vm2, %v624_v6 }
 0x122   : > { %717 = vst.msk [vmem:[%s1330_s23 + $0x68] sm:$0xff] %vm703_vm2, %v616_v5 }
 0x123   : > { %728 = vst.msk [vmem:[%s1330_s23 + $0xc0] sm:$0xff] %vm703_vm2, %v638_v7 }
 0x128   : > { %v630_v9 = vpop.permute.xlu1 %629 }
 0x129   : > { %v622_v8 = vpop.permute.xlu0 %621  ;;  %v644_v10 = vpop.permute.xlu2 %643  ;;  %724 = vst.msk [vmem:[%s1330_s23 + $0xa0] sm:$0xff] %vm703_vm2, %v630_v9 }
 0x12a   : > { %720 = vst.msk [vmem:[%s1330_s23 + $0x80] sm:$0xff] %vm703_vm2, %v622_v8 }
 0x12b   : > { %731 = vst.msk [vmem:[%s1330_s23 + $0xd8] sm:$0xff] %vm703_vm2, %v644_v10 }
 0x130   : > { %v636_v12 = vpop.permute.xlu1 %635 }
 0x131   : > { %v628_v11 = vpop.permute.xlu0 %627  ;;  %v650_v13 = vpop.permute.xlu2 %649  ;;  %727 = vst.msk [vmem:[%s1330_s23 + $0xb8] sm:$0xff] %vm703_vm2, %v636_v12 }
 0x132   : > { %723 = vst.msk [vmem:[%s1330_s23 + $0x98] sm:$0xff] %vm703_vm2, %v628_v11 }
 0x133   : > { %734 = vst.msk [vmem:[%s1330_s23 + $0xf0] sm:$0xff] %vm703_vm2, %v650_v13 }
 0x138   : > { %v642_v37 = vpop.permute.xlu1 %641 }
 0x139   : > { %v634_v15 = vpop.permute.xlu0 %633  ;;  %v656_v39 = vpop.permute.xlu2 %655  ;;  %730 = vst.msk [vmem:[%s1330_s23 + $0xd0] sm:$0xff] %vm703_vm2, %v642_v37 }
 0x13a   : > { %726 = vst.msk [vmem:[%s1330_s23 + $0xb0] sm:$0xff] %vm703_vm2, %v634_v15 }
 0x13b   : > { %737 = vst.msk [vmem:[%s1330_s23 + $0x108] sm:$0xff] %vm703_vm2, %v656_v39 }
 0x140   : > { %v648_v16 = vpop.permute.xlu1 %647 }
 0x141   : > { %v640_v14 = vpop.permute.xlu0 %639  ;;  %v662_v18 = vpop.permute.xlu2 %661  ;;  %733 = vst.msk [vmem:[%s1330_s23 + $0xe8] sm:$0xff] %vm703_vm2, %v648_v16 }
 0x142   : > { %729 = vst.msk [vmem:[%s1330_s23 + $0xc8] sm:$0xff] %vm703_vm2, %v640_v14 }
 0x143   : > { %740 = vst.msk [vmem:[%s1330_s23 + $0x120] sm:$0xff] %vm703_vm2, %v662_v18 }
 0x148   : > { %v654_v42 = vpop.permute.xlu1 %653 }
 0x149   : > { %v646_v41 = vpop.permute.xlu0 %645  ;;  %736 = vst.msk [vmem:[%s1330_s23 + $0x100] sm:$0xff] %vm703_vm2, %v654_v42 }
 0x14a   : > { %732 = vst.msk [vmem:[%s1330_s23 + $0xe0] sm:$0xff] %vm703_vm2, %v646_v41 }
 0x150   : > { %v660_v17 = vpop.permute.xlu1 %659 }
 0x151   : > { %v652_v43 = vpop.permute.xlu0 %651  ;;  %739 = vst.msk [vmem:[%s1330_s23 + $0x118] sm:$0xff] %vm703_vm2, %v660_v17 }
 0x152   : > { %735 = vst.msk [vmem:[%s1330_s23 + $0xf8] sm:$0xff] %vm703_vm2, %v652_v43 }
 0x159   : > { %v658_v19 = vpop.permute.xlu0 %657 }
 0x15a   : > { %738 = vst.msk [vmem:[%s1330_s23 + $0x110] sm:$0xff] %vm703_vm2, %v658_v19 }
 0x161   : > { %v664_v21 = vpop.permute.xlu0 %663 }
 0x162   : > { %742 = vst.msk [vmem:[%s1330_s23 + $0x128] sm:$0xf] %vm741_vm3, %v664_v21 }
 0x163 PF: > { %s13_s11 = sadd.s32 1, %s942_s11   ;;  %s1427_s9 = smov %s938_s10 }
 0x164   : > { %p10_p5 = scmp.ge.s32.totalorder %s13_s11, 4   ;;  %s1428_s10 = smov %s1430_s12 }
 0x166   :  { %12 = sbr.rel (!%p10_p5) target bundleno = 2 (0x2), region = 66 }

</bundles_post_ra>
